<compile_context>
chip_gen: v7x
topology: tpu7x:2x2x1
jax: 0.10.0
libtpu: 0.0.40
codegen_flags: <defaults>
</compile_context>

<pallas_src>
import jax
import jax.numpy as jnp
from jax import lax
from jax.experimental import pallas as pl
from jax.experimental.pallas import tpu as pltpu

BN_EPS = 1e-5
LANE = 128
TILE = 128                       # node tile (rows and contraction), multiple of 128
VMEM_LIMIT = 32 * 1024 * 1024    # explicit scoped-VMEM budget, safe on v5e/v6e/v7x


def _round_up(x, m):
    return (x + m - 1) // m * m


def _pad2(x, rows, cols):
    return jnp.zeros((rows, cols), x.dtype).at[: x.shape[0], : x.shape[1]].set(x)


def _compiler_params(dims):
    return pltpu.CompilerParams(dimension_semantics=dims, vmem_limit_bytes=VMEM_LIMIT)


# ----------------------------- Pallas kernels ------------------------------ #

def _transform_kernel(x_ref, scale_ref, shift_ref, w_ref, b_ref, z_ref):
    # transform[i]: BatchNorm1d (eval stats, folded to scale/shift) -> ReLU ->
    # Dropout (eval = identity) -> Linear, fused with the GCNConv weight (Wcmb = Wlin@Wgcn).
    # TODO(synk): training-mode BN batch statistics / Dropout masking not implemented.
    x = x_ref[...].astype(jnp.float32)
    y = jnp.maximum(x * scale_ref[...] + shift_ref[...], 0.0)
    z = jnp.dot(y.astype(jnp.bfloat16), w_ref[...],
                preferred_element_type=jnp.float32) + b_ref[...]
    z_ref[...] = z.astype(z_ref.dtype)


def _aggregate_kernel(a_ref, z_ref, b_ref, h_ref, acc_ref):
    # conv[i]: h = A_norm @ z + b_gcn, tiled over the contraction (node) axis.
    k = pl.program_id(1)

    @pl.when(k == 0)
    def _():
        acc_ref[...] = jnp.zeros_like(acc_ref)

    acc_ref[...] += jnp.dot(a_ref[...], z_ref[...],
                            preferred_element_type=jnp.float32)

    @pl.when(k == pl.num_programs(1) - 1)
    def _():
        h_ref[...] = (acc_ref[...] + b_ref[...]).astype(h_ref.dtype)


def _readout_kernel(h_ref, mask_ref, bid_ref, cnt_ref, out_ref, sum_ref, max_ref):
    # r = cat([global_mean_pool(h, batch), global_max_pool(h, batch)], dim=1)
    k = pl.program_id(0)
    gpad, hpad = sum_ref.shape

    @pl.when(k == 0)
    def _():
        sum_ref[...] = jnp.zeros_like(sum_ref)
        max_ref[...] = jnp.full_like(max_ref, -jnp.inf)

    h = h_ref[...]                                                   # [tk, Hpad] bf16
    # mean-pool numerator on the MXU (mask is 0/1 so bf16 is exact)
    sum_ref[...] += jnp.dot(mask_ref[...], h, preferred_element_type=jnp.float32)

    # max-pool: per-graph masked 2-D reduction over this node tile (no [G,N,H] temp)
    hf = h.astype(jnp.float32)
    bid = bid_ref[...]                                               # [tk, 1] int32
    for g in range(gpad):                                            # small static loop
        mh = jnp.where(bid == g, hf, -jnp.inf)                       # [tk, Hpad]
        tile_max = jnp.max(mh, axis=0, keepdims=True)                # [1, Hpad]
        max_ref[g:g + 1, :] = jnp.maximum(max_ref[g:g + 1, :], tile_max)

    @pl.when(k == pl.num_programs(0) - 1)
    def _():
        cnt = cnt_ref[...]                                           # [Gpad, 1] f32
        inv = jnp.where(cnt > 0.0,
                        pl.reciprocal(jnp.maximum(cnt, 1.0), approx=True), 0.0)
        out_ref[:, :hpad] = sum_ref[...] * inv
        out_ref[:, hpad:] = jnp.where(cnt > 0.0, max_ref[...], 0.0)  # empty-graph guard


# ------------------------------ wrappers ----------------------------------- #

def gcnx_transform(x, scale, shift, w_cmb, b_cmb, *, tm=TILE):
    n, cin = x.shape
    hpad = w_cmb.shape[1]
    return pl.pallas_call(
        _transform_kernel,
        out_shape=jax.ShapeDtypeStruct((n, hpad), jnp.bfloat16),
        grid_spec=pltpu.PrefetchScalarGridSpec(
            num_scalar_prefetch=0,
            grid=(n // tm,),
            in_specs=[
                pl.BlockSpec((tm, cin), lambda i: (i, 0)),
                pl.BlockSpec((1, cin), lambda i: (0, 0)),
                pl.BlockSpec((1, cin), lambda i: (0, 0)),
                pl.BlockSpec((cin, hpad), lambda i: (0, 0)),
                pl.BlockSpec((1, hpad), lambda i: (0, 0)),
            ],
            out_specs=pl.BlockSpec((tm, hpad), lambda i: (i, 0)),
        ),
        compiler_params=_compiler_params(("parallel",)),
    )(x, scale, shift, w_cmb, b_cmb)


def gcnx_aggregate(a_norm, z, b_gcn, *, tm=TILE, tk=TILE):
    n = a_norm.shape[0]
    hpad = z.shape[1]
    return pl.pallas_call(
        _aggregate_kernel,
        out_shape=jax.ShapeDtypeStruct((n, hpad), jnp.bfloat16),
        grid_spec=pltpu.PrefetchScalarGridSpec(
            num_scalar_prefetch=0,
            grid=(n // tm, n // tk),
            in_specs=[
                pl.BlockSpec((tm, tk), lambda i, k: (i, k)),
                pl.BlockSpec((tk, hpad), lambda i, k: (k, 0)),
                pl.BlockSpec((1, hpad), lambda i, k: (0, 0)),
            ],
            out_specs=pl.BlockSpec((tm, hpad), lambda i, k: (i, 0)),
            scratch_shapes=[pltpu.VMEM((tm, hpad), jnp.float32)],
        ),
        compiler_params=_compiler_params(("parallel", "arbitrary")),
    )(a_norm, z, b_gcn)


def gcnx_readout(h, mask, batch_col, counts, *, tk=TILE):
    n, hpad = h.shape
    gpad = mask.shape[0]
    return pl.pallas_call(
        _readout_kernel,
        out_shape=jax.ShapeDtypeStruct((gpad, 2 * hpad), jnp.float32),
        grid_spec=pltpu.PrefetchScalarGridSpec(
            num_scalar_prefetch=0,
            grid=(n // tk,),
            in_specs=[
                pl.BlockSpec((tk, hpad), lambda k: (k, 0)),
                pl.BlockSpec((gpad, tk), lambda k: (0, k)),
                pl.BlockSpec((tk, 1), lambda k: (k, 0)),
                pl.BlockSpec((gpad, 1), lambda k: (0, 0)),
            ],
            out_specs=pl.BlockSpec((gpad, 2 * hpad), lambda k: (0, 0)),
            scratch_shapes=[pltpu.VMEM((gpad, hpad), jnp.float32),
                            pltpu.VMEM((gpad, hpad), jnp.float32)],
        ),
        compiler_params=_compiler_params(("arbitrary",)),
    )(h, mask, batch_col, counts)


# ------------------------------ glue (JAX) --------------------------------- #

def gcn_norm_dense(edge_index, num_nodes, improved=True):
    """Dense D^-1/2 (A + fill*I) D^-1/2, matching PyG gcn_norm (source->target flow)."""
    src, dst = edge_index[0], edge_index[1]
    a = jnp.zeros((num_nodes, num_nodes), jnp.float32)
    a = a.at[dst, src].add(1.0)                  # A_hat[target, source]
    fill = 2.0 if improved else 1.0
    a = a + fill * jnp.eye(num_nodes, dtype=jnp.float32)
    deg = jnp.sum(a, axis=1)
    dinv = jnp.where(deg > 0, lax.rsqrt(deg), 0.0)
    return dinv[:, None] * a * dinv[None, :]


def init_params(key, iw, hw, conv_depth):
    params = []
    for i in range(conv_depth):
        cin = iw if i == 0 else hw
        key, k1, k2, k3 = jax.random.split(key, 4)
        bn = (jnp.ones((1, cin), jnp.float32),    # gamma
              jnp.zeros((1, cin), jnp.float32),   # beta
              jnp.zeros((1, cin), jnp.float32),   # running_mean
              jnp.ones((1, cin), jnp.float32))    # running_var
        bound = 1.0 / (cin ** 0.5)
        wlin = jax.random.uniform(k1, (cin, hw), jnp.float32, -bound, bound)
        blin = jax.random.uniform(k2, (1, hw), jnp.float32, -bound, bound)
        glorot = (6.0 / (hw + hw)) ** 0.5
        wgcn = jax.random.uniform(k3, (hw, hw), jnp.float32, -glorot, glorot)
        bgcn = jnp.zeros((1, hw), jnp.float32)
        params.append(dict(bn=bn, wlin=wlin, blin=blin, wgcn=wgcn, bgcn=bgcn))
    return params


def prepare_params(params, iw, hw):
    """One-time parameter folding + lane padding (not per-data compute)."""
    hpad = _round_up(hw, LANE)
    prepared = []
    for i, p in enumerate(params):
        cin = iw if i == 0 else hw
        cpad = _round_up(cin, LANE)
        gamma, beta, mean, var = p["bn"]
        scale = gamma * lax.rsqrt(var + BN_EPS)              # BN eval fold
        shift = beta - mean * scale
        w_cmb = p["wlin"] @ p["wgcn"]                        # Linear ∘ GCN weight fold
        b_cmb = p["blin"] @ p["wgcn"]
        prepared.append(dict(
            scale=_pad2(scale, 1, cpad),
            shift=_pad2(shift, 1, cpad),
            w=_pad2(w_cmb, cpad, hpad).astype(jnp.bfloat16),
            b=_pad2(b_cmb, 1, hpad),
            bgcn=_pad2(p["bgcn"], 1, hpad),
        ))
    return prepared


def gcnx_forward(params, x, edge_index, batch, num_graphs, iw, hw):
    n = x.shape[0]
    npad = _round_up(max(n, TILE), TILE)
    hpad = _round_up(hw, LANE)
    cpad0 = _round_up(iw, LANE)
    gpad = _round_up(max(num_graphs, 8), 8)

    a_norm = gcn_norm_dense(edge_index, n, improved=True)
    a_pad = _pad2(a_norm, npad, npad).astype(jnp.bfloat16)
    x_pad = _pad2(x, npad, cpad0).astype(jnp.bfloat16)

    mask = (batch[None, :] == jnp.arange(gpad)[:, None]).astype(jnp.float32)  # [Gpad, n]
    counts = jnp.sum(mask, axis=1, keepdims=True)                             # [Gpad, 1]
    mask_pad = _pad2(mask, gpad, npad).astype(jnp.bfloat16)
    batch_col = jnp.full((npad, 1), -1, jnp.int32).at[:n, 0].set(batch)

    prepared = prepare_params(params, iw, hw)
    h = x_pad
    for p in prepared:
        z = gcnx_transform(h, p["scale"], p["shift"], p["w"], p["b"])
        h = gcnx_aggregate(a_pad, z, p["bgcn"])

    r = gcnx_readout(h, mask_pad, batch_col, counts)          # [Gpad, 2*Hpad]
    return jnp.concatenate([r[:num_graphs, :hw],
                            r[:num_graphs, hpad:hpad + hw]], axis=1)


def reference_forward(params, x, edge_index, batch, num_graphs):
    """Pure-JAX reference matching the PyTorch module (eval semantics)."""
    a_norm = gcn_norm_dense(edge_index, x.shape[0], improved=True)
    h = x
    for p in params:
        gamma, beta, mean, var = p["bn"]
        xn = (h - mean) * lax.rsqrt(var + BN_EPS) * gamma + beta
        y = jnp.maximum(xn, 0.0) @ p["wlin"] + p["blin"]
        h = a_norm @ (y @ p["wgcn"]) + p["bgcn"]
    seg = jax.nn.one_hot(batch, num_graphs, dtype=jnp.float32).T   # [G, N]
    cnt = seg.sum(axis=1, keepdims=True)
    mean_pool = (seg @ h) / cnt
    max_pool = jnp.max(jnp.where(seg[:, :, None] > 0, h[None], -jnp.inf), axis=1)
    return jnp.concatenate([mean_pool, max_pool], axis=1)


# -------------------------------- main -------------------------------------- #

if __name__ == "__main__":
    input_width, hidden_width, output_width, conv_depth = 8, 32, 4, 4
    n_nodes, n_graphs, nodes_per_graph = 16, 2, 8

    key = jax.random.PRNGKey(0)
    kx, _ = jax.random.split(key)
    x = jax.random.normal(kx, (n_nodes, input_width), jnp.float32)

    # two ring graphs of 8 nodes each, both edge directions (undirected)
    edges = []
    for g in range(n_graphs):
        base = g * nodes_per_graph
        for i in range(nodes_per_graph):
            a, b = base + i, base + (i + 1) % nodes_per_graph
            edges.append((a, b))
            edges.append((b, a))
    edge_index = jnp.array(edges, dtype=jnp.int32).T                 # [2, E]
    batch = jnp.repeat(jnp.arange(n_graphs, dtype=jnp.int32), nodes_per_graph)

    params = init_params(jax.random.PRNGKey(42), input_width, hidden_width, conv_depth)

    out = gcnx_forward(params, x, edge_index, batch, n_graphs, input_width, hidden_width)
    out = jax.block_until_ready(out)

    assert out.shape == (n_graphs, 2 * hidden_width)
    assert bool(jnp.all(jnp.isfinite(out)))

    ref = reference_forward(params, x, edge_index, batch, n_graphs)
    assert bool(jnp.allclose(out, ref, rtol=0.1, atol=0.1)), "mismatch vs f32 reference"

    print("KERNEL_OK")
</pallas_src>

<mosaic_0001>
module attributes {stable_mosaic.version = 11 : i64} {
  func.func @_transform_kernel(%arg0: i32, %arg1: memref<128x128xbf16, #tpu.memory_space<vmem>>, %arg2: memref<1x128xf32, #tpu.memory_space<vmem>>, %arg3: memref<1x128xf32, #tpu.memory_space<vmem>>, %arg4: memref<128x128xbf16, #tpu.memory_space<vmem>>, %arg5: memref<1x128xf32, #tpu.memory_space<vmem>>, %arg6: memref<128x128xbf16, #tpu.memory_space<vmem>>) attributes {dimension_semantics = [#tpu.dimension_semantics<parallel>], iteration_bounds = array<i64: 1>, scalar_prefetch = 0 : i64, scratch_operands = 0 : i64, tpu.core_type = #tpu.core_type<tc>, window_params = [{transform_indices = @transform_0, window_bounds = array<i64: 128, 128>}, {pipeline_mode = #tpu.pipeline_mode<synchronous>, transform_indices = @transform_1, window_bounds = array<i64: 1, 128>}, {pipeline_mode = #tpu.pipeline_mode<synchronous>, transform_indices = @transform_2, window_bounds = array<i64: 1, 128>}, {pipeline_mode = #tpu.pipeline_mode<synchronous>, transform_indices = @transform_3, window_bounds = array<i64: 128, 128>}, {pipeline_mode = #tpu.pipeline_mode<synchronous>, transform_indices = @transform_4, window_bounds = array<i64: 1, 128>}, {transform_indices = @transform_5, window_bounds = array<i64: 128, 128>}]} {
    %c0 = arith.constant 0 : index
    %c0_0 = arith.constant 0 : index
    %0 = vector.load %arg1[%c0, %c0_0] : memref<128x128xbf16, #tpu.memory_space<vmem>>, vector<128x128xbf16>
    %1 = arith.extf %0 : vector<128x128xbf16> to vector<128x128xf32>
    %c0_1 = arith.constant 0 : index
    %c0_2 = arith.constant 0 : index
    %2 = vector.load %arg2[%c0_1, %c0_2] : memref<1x128xf32, #tpu.memory_space<vmem>>, vector<1x128xf32>
    %3 = vector.broadcast %2 : vector<1x128xf32> to vector<128x128xf32>
    %4 = arith.mulf %1, %3 : vector<128x128xf32>
    %c0_3 = arith.constant 0 : index
    %c0_4 = arith.constant 0 : index
    %5 = vector.load %arg3[%c0_3, %c0_4] : memref<1x128xf32, #tpu.memory_space<vmem>>, vector<1x128xf32>
    %6 = vector.broadcast %5 : vector<1x128xf32> to vector<128x128xf32>
    %7 = arith.addf %4, %6 : vector<128x128xf32>
    %cst = arith.constant 0.000000e+00 : f32
    %8 = vector.broadcast %cst : f32 to vector<128x128xf32>
    %9 = arith.maximumf %7, %8 : vector<128x128xf32>
    %10 = arith.truncf %9 : vector<128x128xf32> to vector<128x128xbf16>
    %c0_5 = arith.constant 0 : index
    %c0_6 = arith.constant 0 : index
    %11 = vector.load %arg4[%c0_5, %c0_6] : memref<128x128xbf16, #tpu.memory_space<vmem>>, vector<128x128xbf16>
    %cst_7 = arith.constant dense<0.000000e+00> : vector<128x128xf32>
    %12 = tpu.matmul %10, %11, %cst_7 {dimension_numbers = #tpu.dot_dimension_numbers<[1], [0], [0], [1], [0, 0, 1, 1], [], []>} : vector<128x128xbf16>, vector<128x128xbf16>, vector<128x128xf32> -> vector<128x128xf32>
    %c0_8 = arith.constant 0 : index
    %c0_9 = arith.constant 0 : index
    %13 = vector.load %arg5[%c0_8, %c0_9] : memref<1x128xf32, #tpu.memory_space<vmem>>, vector<1x128xf32>
    %14 = vector.broadcast %13 : vector<1x128xf32> to vector<128x128xf32>
    %15 = arith.addf %12, %14 : vector<128x128xf32>
    %16 = arith.truncf %15 : vector<128x128xf32> to vector<128x128xbf16>
    %c0_10 = arith.constant 0 : index
    %c0_11 = arith.constant 0 : index
    %17 = vector.load %arg6[%c0_10, %c0_11] : memref<128x128xbf16, #tpu.memory_space<vmem>>, vector<128x128xbf16>
    tpu.vector_store %arg6[%c0_10, %c0_11], %16 {strides = array<i32>} : memref<128x128xbf16, #tpu.memory_space<vmem>>, vector<128x128xbf16>,
    return
  }
  func.func @transform_0(%arg0: i32) -> (i32, i32) {
    %c0_i32 = arith.constant 0 : i32
    %c0_i32_0 = arith.constant 0 : i32
    return %arg0, %c0_i32 : i32, i32
  }
  func.func @transform_1(%arg0: i32) -> (i32, i32) {
    %c0_i32 = arith.constant 0 : i32
    %c0_i32_0 = arith.constant 0 : i32
    %c0_i32_1 = arith.constant 0 : i32
    return %c0_i32, %c0_i32_0 : i32, i32
  }
  func.func @transform_2(%arg0: i32) -> (i32, i32) {
    %c0_i32 = arith.constant 0 : i32
    %c0_i32_0 = arith.constant 0 : i32
    %c0_i32_1 = arith.constant 0 : i32
    return %c0_i32, %c0_i32_0 : i32, i32
  }
  func.func @transform_3(%arg0: i32) -> (i32, i32) {
    %c0_i32 = arith.constant 0 : i32
    %c0_i32_0 = arith.constant 0 : i32
    %c0_i32_1 = arith.constant 0 : i32
    return %c0_i32, %c0_i32_0 : i32, i32
  }
  func.func @transform_4(%arg0: i32) -> (i32, i32) {
    %c0_i32 = arith.constant 0 : i32
    %c0_i32_0 = arith.constant 0 : i32
    %c0_i32_1 = arith.constant 0 : i32
    return %c0_i32, %c0_i32_0 : i32, i32
  }
  func.func @transform_5(%arg0: i32) -> (i32, i32) {
    %c0_i32 = arith.constant 0 : i32
    %c0_i32_0 = arith.constant 0 : i32
    return %arg0, %c0_i32 : i32, i32
  }
}

</mosaic_0001>

<bundles_post_ra>
// kernel: tpu_custom_call.1
= control target key start
LH: loop header
LB: loop body
LE: loop exit
PB: predicated region body
PF: predicated region fallthrough
CT: control target
= control target key end

     0   :  { %10 = vsyncpa [#allocation3], 0  ;;  %s821_s0 = inlined_call_operand.hbm [shape: bf16[128,128], index: 0, kind: input, shape index: {}]   ;;  %s822_s1 = inlined_call_operand.vmem [shape: f32[1,128], index: 1, kind: input, shape index: {}]   ;;  %s823_s2 = inlined_call_operand.vmem [shape: f32[1,128], index: 2, kind: input, shape index: {}]   ;;  %s824_s3 = inlined_call_operand.hbm [shape: bf16[128,128], index: 3, kind: input, shape index: {}]   ;;  %s825_s4 = inlined_call_operand.vmem [shape: f32[1,128], index: 4, kind: input, shape index: {}]   ;;  %s826_s5 = inlined_call_operand.hbm [shape: bf16[128,128], index: 5, kind: output, shape index: {}]  }
   0x1   :  { %11 = vsyncpa [#allocation6], 0 }
   0x2   :  { %12 = vsyncpa [#allocation4], 0  ;;  %s696_s18 = smov [#allocation2]   ;;  %s624_s22 = scalar_lea.hbm %s821_s0, 1024 }
   0x3   :  { %s18_s19 = sshll.u32 %s696_s18, 4  ;;  %p625_p0 = scmp.ne.s32.totalorder %s821_s0, %s624_s22  ;;  %s19_s19 = int_to_ptr.vmem [resolvable:$true] %s18_s19 }
   0x4   :  { %p628_p1 = scmp.lt.u32.totalorder %s624_s22, %s821_s0 }
   0x6   :  { %p630_p2 = pnand %p628_p1, %p625_p0 }
   0x8   :  { %633 = shalt.err (!%p630_p2)
}
   0x9   :  { %s634_s27 = scalar_lea.vmem %s19_s19, 1024  ;;  %p639_p4 = scmp.lt.s32.totalorder %s19_s19, %s19_s19 }
   0xa   :  { %p635_p3 = scmp.ne.s32.totalorder %s19_s19, %s634_s27  ;;  %p640_p5 = scmp.lt.s32.totalorder %s634_s27, %s634_s27 }
   0xc   :  { %p641_p6 = por %p640_p5, %p639_p4 }
   0xe   :  { %p642_p7 = pnand %p641_p6, %p635_p3 }
  0x10   :  { %645 = shalt.err (!%p642_p7)
}
  0x11   :  { %s697_s28 = smov 64   ;;  %s698_s29 = smov 4  }
  0x12   :  { %24 = dma.hbm_to_vmem [thread:$0]  %s821_s0, 1024, %s19_s19, [#allocation3], %s697_s28, %s697_s28, %s698_s29  }
  0x13   :  { %s699_s7 = smov [#allocation5]   ;;  %s646_s11 = scalar_lea.hbm %s824_s3, 1024 }
  0x14   :  { %s34_s8 = sshll.u32 %s699_s7, 4  ;;  %p647_p8 = scmp.ne.s32.totalorder %s824_s3, %s646_s11  ;;  %s35_s8 = int_to_ptr.vmem [resolvable:$true] %s34_s8 }
  0x15   :  { %p650_p9 = scmp.lt.u32.totalorder %s646_s11, %s824_s3 }
  0x17   :  { %p652_p10 = pnand %p650_p9, %p647_p8 }
  0x19   :  { %655 = shalt.err (!%p652_p10)
}
  0x1a   :  { %s656_s16 = scalar_lea.vmem %s35_s8, 1024  ;;  %p661_p12 = scmp.lt.s32.totalorder %s35_s8, %s35_s8 }
  0x1b   :  { %p657_p11 = scmp.ne.s32.totalorder %s35_s8, %s656_s16  ;;  %p662_p13 = scmp.lt.s32.totalorder %s656_s16, %s656_s16 }
  0x1d   :  { %p663_p0 = por %p662_p13, %p661_p12 }
  0x1f   :  { %p664_p1 = pnand %p663_p0, %p657_p11 }
  0x21   :  { %667 = shalt.err (!%p664_p1)
}
  0x22   :  { %40 = dma.hbm_to_vmem [thread:$0]  %s824_s3, 1024, %s35_s8, [#allocation6], %s697_s28, %s697_s28, %s698_s29  }
  0x23   :  { %690 = dma.done.wait [#allocation3], 1024  }
  0x24   :  { %691 = vsyncadd [#allocation3], 4294966272 }
  0x25   :  { %692 = dma.done.wait [#allocation6], 1024  }
  0x26   :  { %693 = vsyncadd [#allocation6], 4294966272  ;;  %v616_v0 = vld [vmem:[#allocation5] sm:$0xff]   ;;  %v617_v1 = vld [vmem:[#allocation5 + $0x8] sm:$0xff]  }
  0x27   :  { %563 = vmatprep.subr.bf16.mxu0 %v616_v0  ;;  %595 = vmatprep.subr.bf16.mxu1 %v616_v0  ;;  %v618_v2 = vld [vmem:[#allocation5 + $0x10] sm:$0xff]   ;;  %v619_v3 = vld [vmem:[#allocation5 + $0x18] sm:$0xff]   ;;  %v462_v4 = vld [vmem:[#allocation2] sm:$0xff]  }
  0x28   :  { %564 = vmatpush3.bf16.msra.mxu0 %v616_v0  ;;  %603 = vmatpush3.bf16.msra.mxu1 %v616_v0  ;;  %v764_v5 = vld [vmem:[%s822_s1] ss:$0 sm:$0xff]  ;;  %v463_v6 = vunpack.c.l.bf16 %v462_v4  ;;  %v464_v7 = vunpack.c.h.bf16 %v462_v4  ;;  %v533_v9 = vld [vmem:[#allocation2 + $0x8] sm:$0xff]   ;;  %v534_v16 = vld [vmem:[#allocation2 + $0x10] sm:$0xff]  }
  0x29   :  { %565 = vmatprep.subr.bf16.mxu0 %v617_v1  ;;  %596 = vmatprep.subr.bf16.mxu1 %v617_v1  ;;  %v536_v8 = vld [vmem:[#allocation2 + $0x20] sm:$0xff]   ;;  %v537_v13 = vld [vmem:[#allocation2 + $0x28] sm:$0xff]   ;;  %v467_v20 = vunpack.c.l.bf16 %v533_v9  ;;  %v468_v21 = vunpack.c.h.bf16 %v533_v9  ;;  %v471_v28 = vunpack.c.l.bf16 %v534_v16  ;;  %v538_v31 = vld [vmem:[#allocation2 + $0x30] sm:$0xff]   ;;  %v472_v40 = vunpack.c.h.bf16 %v534_v16 }
  0x2a   :  { %v769_v10 = vld [vmem:[%s823_s2] ss:$0 sm:$0xff]  ;;  %v479_v11 = vunpack.c.l.bf16 %v536_v8  ;;  %v480_v12 = vunpack.c.h.bf16 %v536_v8  ;;  %v89_v14 = vmul.f32 %v463_v6, %v764_v5  ;;  %v90_v15 = vmul.f32 %v464_v7, %v764_v5  ;;  %v621_v32 = vld [vmem:[#allocation5 + $0x28] sm:$0xff]   ;;  %v535_v44 = vld [vmem:[#allocation2 + $0x18] sm:$0xff]  }
  0x2b   :  { %v620_v17 = vld [vmem:[#allocation5 + $0x20] sm:$0xff]   ;;  %v483_v24 = vunpack.c.l.bf16 %v537_v13  ;;  %v484_v25 = vunpack.c.h.bf16 %v537_v13  ;;  %v91_v35 = vmul.f32 %v467_v20, %v764_v5  ;;  %v92_v36 = vmul.f32 %v468_v21, %v764_v5  ;;  %v539_v47 = vld [vmem:[#allocation2 + $0x38] sm:$0xff]   ;;  %v622_v48 = vld [vmem:[#allocation5 + $0x30] sm:$0xff]  }
  0x2c   :  { %566 = vmatpush3.bf16.msra.mxu0 %v617_v1  ;;  %604 = vmatpush3.bf16.msra.mxu1 %v617_v1  ;;  %v97_v18 = vmul.f32 %v479_v11, %v764_v5  ;;  %v98_v19 = vmul.f32 %v480_v12, %v764_v5  ;;  %v112_v22 = vadd.f32 %v769_v10, %v89_v14  ;;  %v487_v43 = vunpack.c.l.bf16 %v538_v31  ;;  %v623_v63 = vld [vmem:[#allocation5 + $0x38] sm:$0xff]  }
  0x2d   :  { %567 = vmatprep.subr.bf16.mxu0 %v618_v2  ;;  %597 = vmatprep.subr.bf16.mxu1 %v618_v2  ;;  %v113_v23 = vadd.f32 %v769_v10, %v90_v15  ;;  %v99_v38 = vmul.f32 %v483_v24, %v764_v5  ;;  %v100_v39 = vmul.f32 %v484_v25, %v764_v5  ;;  %v488_v46 = vunpack.c.h.bf16 %v538_v31 }
  0x2e   :  { %v120_v26 = vadd.f32 %v769_v10, %v97_v18  ;;  %v121_v27 = vadd.f32 %v769_v10, %v98_v19  ;;  %v128_v29 = vmax.f32 %v112_v22, 0.0  ;;  %v93_v42 = vmul.f32 %v471_v28, %v764_v5 }
  0x2f   :  { %v129_v30 = vmax.f32 %v113_v23, 0.0  ;;  %v94_v45 = vmul.f32 %v472_v40, %v764_v5  ;;  %v114_v49 = vadd.f32 %v769_v10, %v91_v35  ;;  %v115_v50 = vadd.f32 %v769_v10, %v92_v36 }
  0x30   :  { %568 = vmatpush3.bf16.msra.mxu0 %v618_v2  ;;  %605 = vmatpush3.bf16.msra.mxu1 %v618_v2  ;;  %v136_v33 = vmax.f32 %v120_v26, 0.0  ;;  %v137_v34 = vmax.f32 %v121_v27, 0.0  ;;  %v101_v51 = vmul.f32 %v487_v43, %v764_v5  ;;  %v122_v52 = vadd.f32 %v769_v10, %v99_v38 }
  0x31   :  { %569 = vmatprep.subr.bf16.mxu0 %v619_v3  ;;  %598 = vmatprep.subr.bf16.mxu1 %v619_v3  ;;  %v144_v37 = vpack.c.bf16 %v129_v30, %v128_v29  ;;  %v123_v53 = vadd.f32 %v769_v10, %v100_v39  ;;  %v102_v54 = vmul.f32 %v488_v46, %v764_v5  ;;  %v475_v55 = vunpack.c.l.bf16 %v535_v44 }
  0x32   :  { %v148_v41 = vpack.c.bf16 %v137_v34, %v136_v33  ;;  %v116_v56 = vadd.f32 %v769_v10, %v93_v42  ;;  %v476_v57 = vunpack.c.h.bf16 %v535_v44  ;;  %v491_v58 = vunpack.c.l.bf16 %v539_v47 }
  0x33   :  { %579 = vmatprep.mubr.bf16.mxu0 %v144_v37  ;;  %v492_v59 = vunpack.c.h.bf16 %v539_v47  ;;  %v117_v60 = vadd.f32 %v769_v10, %v94_v45  ;;  %v124_v61 = vadd.f32 %v769_v10, %v101_v51  ;;  %v125_v62 = vadd.f32 %v769_v10, %v102_v54 }
  0x34   :  { %570 = vmatpush3.bf16.msra.mxu0 %v619_v3  ;;  %606 = vmatpush3.bf16.msra.mxu1 %v619_v3  ;;  %v130_v0 = vmax.f32 %v114_v49, 0.0  ;;  %v131_v1 = vmax.f32 %v115_v50, 0.0  ;;  %v138_v2 = vmax.f32 %v122_v52, 0.0  ;;  %v139_v3 = vmax.f32 %v123_v53, 0.0 }
  0x35   :  { %571 = vmatprep.subr.bf16.mxu0 %v620_v17  ;;  %599 = vmatprep.subr.bf16.mxu1 %v620_v17  ;;  %v95_v4 = vmul.f32 %v475_v55, %v764_v5  ;;  %v96_v6 = vmul.f32 %v476_v57, %v764_v5  ;;  %v103_v7 = vmul.f32 %v491_v58, %v764_v5  ;;  %v132_v9 = vmax.f32 %v116_v56, 0.0 }
  0x36   :  { %587 = vmatprep.mubr.bf16.mxu1 %v148_v41  ;;  %v104_v8 = vmul.f32 %v492_v59, %v764_v5  ;;  %v133_v11 = vmax.f32 %v117_v60, 0.0  ;;  %v140_v12 = vmax.f32 %v124_v61, 0.0  ;;  %v141_v13 = vmax.f32 %v125_v62, 0.0 }
  0x37   :  { %v145_v14 = vpack.c.bf16 %v131_v1, %v130_v0  ;;  %v149_v15 = vpack.c.bf16 %v139_v3, %v138_v2  ;;  %v118_v16 = vadd.f32 %v769_v10, %v95_v4  ;;  %v126_v18 = vadd.f32 %v769_v10, %v103_v7 }
  0x38   :  { %572 = vmatpush3.bf16.msra.mxu0 %v620_v17  ;;  %607 = vmatpush3.bf16.msra.mxu1 %v620_v17  ;;  %v119_v17 = vadd.f32 %v769_v10, %v96_v6  ;;  %v127_v19 = vadd.f32 %v769_v10, %v104_v8  ;;  %v146_v5 = vpack.c.bf16 %v133_v11, %v132_v9  ;;  %v420_v10 = vld [vmem:[%s825_s4] ss:$0 sm:$0xff]  ;;  %s700_s4 = smov [#allocation7]  }
  0x39   :  { %573 = vmatprep.subr.bf16.mxu0 %v621_v32  ;;  %600 = vmatprep.subr.bf16.mxu1 %v621_v32  ;;  %v150_v20 = vpack.c.bf16 %v141_v13, %v140_v12  ;;  %v134_v21 = vmax.f32 %v118_v16, 0.0  ;;  %v142_v23 = vmax.f32 %v126_v18, 0.0  ;;  %s405_s21 = sshll.u32 %s700_s4, 4  ;;  %s406_s21 = int_to_ptr.vmem [resolvable:$true] %s405_s21 }
  0x3a   :  { %v135_v22 = vmax.f32 %v119_v17, 0.0  ;;  %v143_v24 = vmax.f32 %v127_v19, 0.0  ;;  %s668_s22 = scalar_lea.vmem %s406_s21, 1024  ;;  %p673_p3 = scmp.lt.s32.totalorder %s406_s21, %s406_s21 }
  0x3b   :  { %p669_p2 = scmp.ne.s32.totalorder %s406_s21, %s668_s22  ;;  %p674_p4 = scmp.lt.s32.totalorder %s668_s22, %s668_s22 }
  0x3c   :  { %574 = vmatpush3.bf16.msra.mxu0 %v621_v32  ;;  %608 = vmatpush3.bf16.msra.mxu1 %v621_v32  ;;  %v147_v25 = vpack.c.bf16 %v135_v22, %v134_v21  ;;  %v151_v26 = vpack.c.bf16 %v143_v24, %v142_v23 }
  0x3d   :  { %575 = vmatprep.subr.bf16.mxu0 %v622_v48  ;;  %601 = vmatprep.subr.bf16.mxu1 %v622_v48  ;;  %p675_p5 = por %p674_p4, %p673_p3 }
  0x3f   :  { %p676_p6 = pnand %p675_p5, %p669_p2 }
  0x40   :  { %576 = vmatpush3.bf16.msra.mxu0 %v622_v48  ;;  %609 = vmatpush3.bf16.msra.mxu1 %v622_v48 }
  0x41   :  { %577 = vmatprep.subr.bf16.mxu0 %v623_v63  ;;  %602 = vmatprep.subr.bf16.mxu1 %v623_v63 }
  0x44   :  { %578 = vmatpush3.bf16.msra.mxu0 %v623_v63  ;;  %610 = vmatpush3.bf16.msra.mxu1 %v623_v63 }
  0x47   :  { %580 = vmatmul.mubr.bf16.vlgmr.msra.gmra.mrb[0].mxu0 %v145_v14  ;;  %588 = vmatmul.mubr.bf16.vlgmr.msra.gmra.mrb[0].mxu1 %v149_v15 }
  0x48   :  { %583 = vmatprep.mubr.bf16.mxu0 %v146_v5  ;;  %591 = vmatprep.mubr.bf16.mxu1 %v150_v20 }
  0x4f   :  { %584 = vmatmul.mubr.bf16.gmra.mrb[4].mxu0 %v147_v25  ;;  %592 = vmatmul.mubr.bf16.gmra.mrb[4].mxu1 %v151_v26 }
 0x11a   :  { %v581_v27 = vpop.f32.mrb[0].mxu0  ;;  %v589_v28 = vpop.f32.mrb[0].mxu1 }
 0x11b   :  { %v257_v29 = vpop.f32.mrb[1].mxu0  ;;  %v289_v30 = vpop.f32.mrb[1].mxu1  ;;  %v266_v33 = vadd.f32 %v581_v27, %v420_v10  ;;  %v298_v34 = vadd.f32 %v589_v28, %v420_v10 }
 0x11c   :  { %v582_v31 = vpop.f32.mrb[2].mxu0  ;;  %v590_v32 = vpop.f32.mrb[2].mxu1  ;;  %v258_v39 = vadd.f32 %v420_v10, %v257_v29  ;;  %v290_v40 = vadd.f32 %v420_v10, %v289_v30 }
 0x11d   :  { %v269_v35 = vadd.f32 %v582_v31, %v420_v10  ;;  %v301_v36 = vadd.f32 %v590_v32, %v420_v10  ;;  %v260_v37 = vpop.f32.mrb[3].mxu0  ;;  %v292_v38 = vpop.f32.mrb[3].mxu1 }
 0x11e   :  { %v261_v41 = vadd.f32 %v420_v10, %v260_v37  ;;  %v293_v42 = vadd.f32 %v420_v10, %v292_v38 }
 0x11f   :  { %v501_v43 = vpack.c.bf16 %v269_v35, %v266_v33  ;;  %v521_v44 = vpack.c.bf16 %v301_v36, %v298_v34 }
 0x120   :  { %v496_v45 = vpack.c.bf16 %v261_v41, %v258_v39  ;;  %v516_v46 = vpack.c.bf16 %v293_v42, %v290_v40 }
 0x121   :  { %540 = vst [vmem:[#allocation7 + $0x8] sm:$0xff] %v501_v43   ;;  %544 = vst [vmem:[#allocation7 + $0x28] sm:$0xff] %v521_v44  }
 0x122   :  { %497 = vst [vmem:[#allocation7] sm:$0xff] %v496_v45   ;;  %543 = vst [vmem:[#allocation7 + $0x20] sm:$0xff] %v516_v46   ;;  %v585_v47 = vpop.f32.mrb[4].mxu0  ;;  %v593_v48 = vpop.f32.mrb[4].mxu1 }
 0x123   :  { %v273_v49 = vpop.f32.mrb[5].mxu0  ;;  %v305_v50 = vpop.f32.mrb[5].mxu1  ;;  %v282_v53 = vadd.f32 %v585_v47, %v420_v10  ;;  %v314_v54 = vadd.f32 %v593_v48, %v420_v10 }
 0x124   :  { %v586_v51 = vpop.f32.mrb[6].mxu0  ;;  %v594_v52 = vpop.f32.mrb[6].mxu1  ;;  %v274_v59 = vadd.f32 %v420_v10, %v273_v49  ;;  %v306_v60 = vadd.f32 %v420_v10, %v305_v50 }
 0x125   :  { %v285_v55 = vadd.f32 %v586_v51, %v420_v10  ;;  %v317_v56 = vadd.f32 %v594_v52, %v420_v10  ;;  %v276_v57 = vpop.f32.mrb[7].mxu0  ;;  %v308_v58 = vpop.f32.mrb[7].mxu1 }
 0x126   :  { %v277_v61 = vadd.f32 %v420_v10, %v276_v57  ;;  %v309_v62 = vadd.f32 %v420_v10, %v308_v58 }
 0x127   :  { %v511_v63 = vpack.c.bf16 %v285_v55, %v282_v53  ;;  %v531_v0 = vpack.c.bf16 %v317_v56, %v314_v54 }
 0x128   :  { %v506_v1 = vpack.c.bf16 %v277_v61, %v274_v59  ;;  %v526_v2 = vpack.c.bf16 %v309_v62, %v306_v60 }
 0x129   :  { %542 = vst [vmem:[#allocation7 + $0x18] sm:$0xff] %v511_v63   ;;  %546 = vst [vmem:[#allocation7 + $0x38] sm:$0xff] %v531_v0  }
 0x12a   :  { %541 = vst [vmem:[#allocation7 + $0x10] sm:$0xff] %v506_v1   ;;  %545 = vst [vmem:[#allocation7 + $0x30] sm:$0xff] %v526_v2  }
 0x12b   :  { %679 = shalt.err (!%p676_p6)
}
 0x12c   :  { %s680_s25 = scalar_lea.hbm %s826_s5, 1024 }
 0x12d   :  { %p681_p7 = scmp.ne.s32.totalorder %s826_s5, %s680_s25  ;;  %p684_p8 = scmp.lt.u32.totalorder %s680_s25, %s826_s5 }
 0x12f   :  { %p686_p9 = pnand %p684_p8, %p681_p7 }
 0x131   :  { %689 = shalt.err (!%p686_p9)
}
 0x132   :  { %411 = dma.vmem_to_hbm [thread:$0]  %s406_s21, 1024, %s826_s5, [#allocation4], %s697_s28, %s697_s28, %s698_s29  }
 0x133   :  { %694 = dma.done.wait [#allocation4], 1024  }
 0x134   :  { %695 = vsyncadd [#allocation4], 4294966272 }
 0x135   :  { %415 = vsyncpa [#allocation3], 1 }
 0x136   :  { %416 = vsyncpa [#allocation6], 1 }
 0x137   :  { %417 = vsyncpa [#allocation4], 1 }

</bundles_post_ra>
